<compile_context>
chip_gen: v7x
topology: tpu7x:2x2x1
jax: 0.10.0
libtpu: 0.0.40
codegen_flags: <defaults>
</compile_context>

<pallas_src>
import functools

import jax
import jax.numpy as jnp
from jax.experimental import pallas as pl
from jax.experimental.pallas import tpu as pltpu


def _dice_sums_kernel(x_ref, tgt_ref, out_ref, acc_ref, *,
                      apply_softmax, hw, tile_n, num_tiles, tiles_per_split,
                      chunk):
    """Accumulates per-class [intersect, z_sum, y_sum] for one (batch, split).

    x_ref:   (C, tn) score block (any float dtype; upcast to f32 here)
    tgt_ref: (1, tn) integer label block (int8 or int32)
    out_ref: (C, 3)  per-(batch, split) sums, written once at the last tile
    acc_ref: (3, C, acc_lanes) f32 lane-resident accumulators
    """
    s = pl.program_id(1)
    t = pl.program_id(2)

    @pl.when(t == 0)
    def _():
        acc_ref[...] = jnp.zeros_like(acc_ref)

    score_raw = x_ref[...].astype(jnp.float32)                      # (C, tn)
    tgt = tgt_ref[...].astype(jnp.int32)                            # (1, tn)
    c, tn = score_raw.shape
    class_ids = jax.lax.broadcasted_iota(jnp.int32, (c, 1), 0)      # (C, 1)

    def normalize(sc):
        if apply_softmax:
            # Softmax over the class (sublane) axis, per spatial location.
            # EUP approximate reciprocal (~1e-3 rel err); use approx=False if
            # this loss feeds gradient-sensitive training.
            m = jnp.max(sc, axis=0, keepdims=True)
            e = jnp.exp(sc - m)
            sc = e * pl.reciprocal(jnp.sum(e, axis=0, keepdims=True),
                                   approx=True)
        return sc

    def accumulate(sc, oh):
        if chunk:
            # Lane-resident partial sums over static, lane-aligned chunks:
            # pure VALU adds, no per-tile cross-lane XLU reduction.
            s_k = sc[:, 0:chunk]
            o_k = oh[:, 0:chunk]
            pi, pz, py = s_k * o_k, s_k * s_k, o_k
            for k in range(1, tn // chunk):
                sl = slice(k * chunk, (k + 1) * chunk)
                s_k = sc[:, sl]
                o_k = oh[:, sl]
                pi = pi + s_k * o_k
                pz = pz + s_k * s_k
                py = py + o_k
            acc_ref[0, :, :] += pi
            acc_ref[1, :, :] += pz
            acc_ref[2, :, :] += py
        else:
            # Single odd-width tile: reduce fully, park the result in lane 0.
            acc_ref[0, :, 0:1] += jnp.sum(sc * oh, axis=1, keepdims=True)
            acc_ref[1, :, 0:1] += jnp.sum(sc * sc, axis=1, keepdims=True)
            acc_ref[2, :, 0:1] += jnp.sum(oh, axis=1, keepdims=True)

    if hw % tile_n == 0:
        # No tail tile anywhere: emit zero masking code (static decision).
        accumulate(normalize(score_raw),
                   (tgt == class_ids).astype(jnp.float32))
    else:
        g = s * tiles_per_split + t            # global tile index along H*W

        @pl.when(g != num_tiles - 1)           # full tiles: unmasked fast path
        def _():
            accumulate(normalize(score_raw),
                       (tgt == class_ids).astype(jnp.float32))

        @pl.when(g == num_tiles - 1)           # tail tile: mask OOB columns
        def _():
            col = g * tile_n + jax.lax.broadcasted_iota(jnp.int32, (1, tn), 1)
            valid = col < hw
            # Select (not multiply): NaN/Inf from unspecified OOB VMEM cannot
            # propagate through jnp.where.
            sc = jnp.where(valid, normalize(score_raw), 0.0)
            oh = ((tgt == class_ids) & valid).astype(jnp.float32)
            accumulate(sc, oh)

    @pl.when(t == tiles_per_split - 1)
    def _():
        # Epilogue runs once per (batch, split): 3 small cross-lane reductions
        # and 3 tiny lane-slice stores are negligible here.
        out_ref[:, 0:1] = jnp.sum(acc_ref[0], axis=1, keepdims=True)
        out_ref[:, 1:2] = jnp.sum(acc_ref[1], axis=1, keepdims=True)
        out_ref[:, 2:3] = jnp.sum(acc_ref[2], axis=1, keepdims=True)


def _pick_chunk(tile_n):
    """Widest lane chunk (multiple of 128) dividing tile_n; 0 => fallback."""
    for c in (512, 256, 128):
        if tile_n % c == 0:
            return c
    return 0


def _pick_tile_n(c, hw, score_itemsize):
    """Lane-tile width: fits ~8 MiB of double-buffered inputs, capped at 16K.

    Accounts for sublane padding: a (C, tn) block with C below the native
    sublane count and the (1, tn) label block each occupy at least a full
    (8,128)-equivalent tile column, i.e. 32 bytes per lane column per buffer.
    The 8 MiB budget stays well inside v7x's 32 MiB scoped / 64 MiB physical
    VMEM; v5e/v6e could afford more but gain nothing past this point.
    """
    budget = 8 * 1024 * 1024
    score_col = max(c * score_itemsize, 32)
    label_col = 32
    t = budget // ((score_col + label_col) * 2)    # x2: double-buffered
    t = max(512, min(16384, t))
    t = (t // 512) * 512                           # chunk- and lane-aligned
    if hw <= t:
        return hw                                  # single full-width tile
    return t


def dice_loss(inputs, target, n_classes, weight=None, softmax=False,
              tile_n=None, spatial_splits=None, label_dtype=None):
    """Pallas implementation of DiceLoss.forward.

    inputs: (B, C, H, W) float (probabilities, or logits if softmax=True);
            f32 or bf16 both accepted (bf16 halves the dominant HBM stream).
    target: (B, H, W) integer class labels in [0, n_classes)
    """
    B, C, H, W = inputs.shape
    assert C == n_classes, f"predict C={C} & n_classes={n_classes} do not match"
    assert target.shape == (B, H, W), (target.shape, (B, H, W))
    HW = H * W

    if tile_n is None:
        tile_n = _pick_tile_n(C, HW, jnp.dtype(inputs.dtype).itemsize)
    elif tile_n >= HW:
        tile_n = HW
    else:
        assert tile_n % 128 == 0, "tile_n must be a multiple of 128 when it tiles H*W"
    num_tiles = pl.cdiv(HW, tile_n)

    if spatial_splits is None:
        # Second parallel grid axis: lets a v7x megacore use both TensorCores
        # even at B == 1; harmless extra loop level on single-TC v5e/v6e.
        spatial_splits = 2 if (num_tiles >= 2 and num_tiles % 2 == 0) else 1
    assert num_tiles % spatial_splits == 0
    tiles_per_split = num_tiles // spatial_splits

    chunk = _pick_chunk(tile_n)
    acc_lanes = chunk if chunk else 128

    # Free views: no transpose, no pad, no extra HBM pass.
    score = inputs.reshape(B, C, HW)
    if label_dtype is None:
        label_dtype = jnp.int8 if n_classes < 128 else jnp.int32
    labels = target.reshape(B, 1, HW).astype(label_dtype)   # ~4x less label traffic

    kernel = functools.partial(
        _dice_sums_kernel, apply_softmax=softmax, hw=HW, tile_n=tile_n,
        num_tiles=num_tiles, tiles_per_split=tiles_per_split, chunk=chunk)

    per_split = pl.pallas_call(
        kernel,
        out_shape=jax.ShapeDtypeStruct((B, spatial_splits, C, 3), jnp.float32),
        grid_spec=pltpu.PrefetchScalarGridSpec(
            num_scalar_prefetch=0,
            grid=(B, spatial_splits, tiles_per_split),
            in_specs=[
                pl.BlockSpec((None, C, tile_n),
                             lambda b, s, t: (b, 0, s * tiles_per_split + t)),
                pl.BlockSpec((None, 1, tile_n),
                             lambda b, s, t: (b, 0, s * tiles_per_split + t)),
            ],
            out_specs=pl.BlockSpec((None, None, C, 3),
                                   lambda b, s, t: (b, s, 0, 0)),
            scratch_shapes=[pltpu.VMEM((3, C, acc_lanes), jnp.float32)],
        ),
        compiler_params=pltpu.CompilerParams(
            dimension_semantics=("parallel", "parallel", "arbitrary"),
            vmem_limit_bytes=32 * 1024 * 1024,
        ),
    )(score, labels)

    sums = jnp.sum(per_split, axis=(0, 1))                   # (C, 3) over batch & splits
    intersect, z_sum, y_sum = sums[:, 0], sums[:, 1], sums[:, 2]
    smooth = 1e-05
    dice = 1.0 - (2.0 * intersect + smooth) / (z_sum + y_sum + smooth)   # (C,)

    if weight is None:
        weight = jnp.ones((n_classes,), jnp.float32)
    else:
        weight = jnp.asarray(weight, jnp.float32)

    return jnp.sum(dice * weight) / n_classes


def _dice_loss_ref(inputs, target, n_classes, weight=None, softmax=False):
    """Pure-JAX reference mirroring the PyTorch module."""
    if softmax:
        inputs = jax.nn.softmax(inputs, axis=1)
    onehot = jax.nn.one_hot(target, n_classes, axis=1, dtype=jnp.float32)
    if weight is None:
        weight = [1.0] * n_classes
    smooth = 1e-05
    loss = 0.0
    for i in range(n_classes):
        s = inputs[:, i].astype(jnp.float32)
        t = onehot[:, i]
        intersect = jnp.sum(s * t)
        y = jnp.sum(t * t)
        z = jnp.sum(s * s)
        d = 1.0 - (2 * intersect + smooth) / (z + y + smooth)
        loss = loss + d * weight[i]
    return loss / n_classes


if __name__ == "__main__":
    key = jax.random.PRNGKey(0)
    k1, k2, k3, k4, k5, k6 = jax.random.split(key, 6)
    B, C = 2, 4

    # 1) 16x16: single full-width tile, no masking code, probabilities input.
    inputs = jax.nn.softmax(jax.random.normal(k1, (B, C, 16, 16), jnp.float32), axis=1)
    target = jax.random.randint(k2, (B, 16, 16), 0, C, jnp.int32)
    out = jax.block_until_ready(dice_loss(inputs, target, n_classes=C, softmax=False))
    ref = _dice_loss_ref(inputs, target, n_classes=C, softmax=False)
    assert jnp.allclose(out, ref, atol=1e-5, rtol=1e-5), (out, ref)

    # softmax=True path on raw logits (approx reciprocal -> slightly looser tol)
    logits = jax.random.normal(k1, (B, C, 16, 16), jnp.float32)
    out_sm = jax.block_until_ready(dice_loss(logits, target, n_classes=C, softmax=True))
    ref_sm = _dice_loss_ref(logits, target, n_classes=C, softmax=True)
    assert jnp.allclose(out_sm, ref_sm, atol=2e-3, rtol=2e-3), (out_sm, ref_sm)

    # bf16 scores (halved HBM traffic); kernel upcasts to f32 internally.
    out_bf = jax.block_until_ready(
        dice_loss(inputs.astype(jnp.bfloat16), target, n_classes=C, softmax=False))
    ref_bf = _dice_loss_ref(inputs.astype(jnp.bfloat16).astype(jnp.float32),
                            target, n_classes=C, softmax=False)
    assert jnp.allclose(out_bf, ref_bf, atol=1e-4, rtol=1e-4), (out_bf, ref_bf)

    # 2) 24x24 with tile_n=256: 3 tiles (odd -> single split), masked tail of 64.
    logits2 = jax.random.normal(k3, (B, C, 24, 24), jnp.float32)
    target2 = jax.random.randint(k4, (B, 24, 24), 0, C, jnp.int32)
    out2 = jax.block_until_ready(
        dice_loss(logits2, target2, n_classes=C, softmax=True, tile_n=256))
    ref2 = _dice_loss_ref(logits2, target2, n_classes=C, softmax=True)
    assert jnp.allclose(out2, ref2, atol=2e-3, rtol=2e-3), (out2, ref2)

    # 3) 40x40 with tile_n=512: 4 tiles -> spatial_splits=2 (megacore path),
    #    512-lane chunked accumulators, masked tail of 64, non-unit weights.
    probs3 = jax.nn.softmax(jax.random.normal(k5, (B, C, 40, 40), jnp.float32), axis=1)
    target3 = jax.random.randint(k6, (B, 40, 40), 0, C, jnp.int32)
    w = [0.5, 1.0, 2.0, 1.5]
    out3 = jax.block_until_ready(
        dice_loss(probs3, target3, n_classes=C, weight=w, softmax=False, tile_n=512))
    ref3 = _dice_loss_ref(probs3, target3, n_classes=C, weight=w, softmax=False)
    assert jnp.allclose(out3, ref3, atol=1e-5, rtol=1e-5), (out3, ref3)

    # 4) odd spatial (10x10): single 100-wide tile, lane-0 fallback accumulator.
    probs4 = jax.nn.softmax(jax.random.normal(k3, (B, C, 10, 10), jnp.float32), axis=1)
    target4 = jax.random.randint(k4, (B, 10, 10), 0, C, jnp.int32)
    out4 = jax.block_until_ready(dice_loss(probs4, target4, n_classes=C, softmax=False))
    ref4 = _dice_loss_ref(probs4, target4, n_classes=C, softmax=False)
    assert jnp.allclose(out4, ref4, atol=1e-5, rtol=1e-5), (out4, ref4)

    print("KERNEL_OK")
</pallas_src>

<mosaic_0001>
module attributes {stable_mosaic.version = 11 : i64} {
  func.func @_dice_sums_kernel(%arg0: i32, %arg1: i32, %arg2: i32, %arg3: memref<1x4x256xf32, #tpu.memory_space<vmem>>, %arg4: memref<1x1x256xi8, #tpu.memory_space<vmem>>, %arg5: memref<1x1x4x3xf32, #tpu.memory_space<vmem>>, %arg6: memref<3x4x256xf32, #tpu.memory_space<vmem>>) attributes {dimension_semantics = [#tpu.dimension_semantics<parallel>, #tpu.dimension_semantics<parallel>, #tpu.dimension_semantics<arbitrary>], iteration_bounds = array<i64: 2, 1, 1>, scalar_prefetch = 0 : i64, scratch_operands = 1 : i64, tpu.core_type = #tpu.core_type<tc>, window_params = [{transform_indices = @transform_0, window_bounds = array<i64: 1, 4, 256>}, {transform_indices = @transform_1, window_bounds = array<i64: 1, 1, 256>}, {transform_indices = @transform_2, window_bounds = array<i64: 1, 1, 4, 3>}]} {
    %c0_i32 = arith.constant 0 : i32
    %0 = arith.cmpi eq, %arg2, %c0_i32 : i32
    %1 = arith.extui %0 : i1 to i32
    %c0_i32_0 = arith.constant 0 : i32
    %2 = arith.cmpi ne, %1, %c0_i32_0 : i32
    scf.if %2 {
      %cst = arith.constant 0.000000e+00 : f32
      %37 = vector.broadcast %cst : f32 to vector<3x4x256xf32>
      %c0_24 = arith.constant 0 : index
      %c0_25 = arith.constant 0 : index
      %c0_26 = arith.constant 0 : index
      %38 = vector.load %arg6[%c0_24, %c0_25, %c0_26] : memref<3x4x256xf32, #tpu.memory_space<vmem>>, vector<3x4x256xf32>
      tpu.vector_store %arg6[%c0_24, %c0_25, %c0_26], %37 {strides = array<i32>} : memref<3x4x256xf32, #tpu.memory_space<vmem>>, vector<3x4x256xf32>,
    } else {
    }
    %c0 = arith.constant 0 : index
    %c0_1 = arith.constant 0 : index
    %c0_2 = arith.constant 0 : index
    %3 = vector.load %arg3[%c0, %c0_1, %c0_2] : memref<1x4x256xf32, #tpu.memory_space<vmem>>, vector<1x4x256xf32>
    %4 = vector.shape_cast %3 : vector<1x4x256xf32> to vector<4x256xf32>
    %c0_3 = arith.constant 0 : index
    %c0_4 = arith.constant 0 : index
    %c0_5 = arith.constant 0 : index
    %5 = vector.load %arg4[%c0_3, %c0_4, %c0_5] : memref<1x1x256xi8, #tpu.memory_space<vmem>>, vector<1x1x256xi8>
    %6 = vector.shape_cast %5 : vector<1x1x256xi8> to vector<1x256xi8>
    %7 = arith.extsi %6 : vector<1x256xi8> to vector<1x256xi32>
    %8 = tpu.iota {dimensions = array<i32: 0>} : vector<4x1xi32>
    %9 = vector.broadcast %7 : vector<1x256xi32> to vector<4x256xi32>
    %10 = vector.broadcast %8 : vector<4x1xi32> to vector<4x256xi32>
    %11 = arith.cmpi eq, %9, %10 : vector<4x256xi32>
    %12 = arith.extui %11 : vector<4x256xi1> to vector<4x256xi32>
    %13 = arith.sitofp %12 : vector<4x256xi32> to vector<4x256xf32>
    %14 = arith.mulf %4, %13 : vector<4x256xf32>
    %15 = arith.mulf %4, %4 : vector<4x256xf32>
    %c0_6 = arith.constant 0 : index
    %c0_7 = arith.constant 0 : index
    %c0_8 = arith.constant 0 : index
    %16 = vector.load %arg6[%c0_6, %c0_7, %c0_8] : memref<3x4x256xf32, #tpu.memory_space<vmem>>, vector<1x4x256xf32>
    %17 = vector.shape_cast %16 : vector<1x4x256xf32> to vector<4x256xf32>
    %18 = arith.addf %17, %14 : vector<4x256xf32>
    %c0_9 = arith.constant 0 : index
    %c0_10 = arith.constant 0 : index
    %c0_11 = arith.constant 0 : index
    %19 = vector.load %arg6[%c0_9, %c0_10, %c0_11] : memref<3x4x256xf32, #tpu.memory_space<vmem>>, vector<1x4x256xf32>
    %20 = vector.shape_cast %19 : vector<1x4x256xf32> to vector<4x256xf32>
    %21 = vector.shape_cast %18 : vector<4x256xf32> to vector<1x4x256xf32>
    tpu.vector_store %arg6[%c0_9, %c0_10, %c0_11], %21 {strides = array<i32>} : memref<3x4x256xf32, #tpu.memory_space<vmem>>, vector<1x4x256xf32>,
    %c1 = arith.constant 1 : index
    %c0_12 = arith.constant 0 : index
    %c0_13 = arith.constant 0 : index
    %22 = vector.load %arg6[%c1, %c0_12, %c0_13] : memref<3x4x256xf32, #tpu.memory_space<vmem>>, vector<1x4x256xf32>
    %23 = vector.shape_cast %22 : vector<1x4x256xf32> to vector<4x256xf32>
    %24 = arith.addf %23, %15 : vector<4x256xf32>
    %c1_14 = arith.constant 1 : index
    %c0_15 = arith.constant 0 : index
    %c0_16 = arith.constant 0 : index
    %25 = vector.load %arg6[%c1_14, %c0_15, %c0_16] : memref<3x4x256xf32, #tpu.memory_space<vmem>>, vector<1x4x256xf32>
    %26 = vector.shape_cast %25 : vector<1x4x256xf32> to vector<4x256xf32>
    %27 = vector.shape_cast %24 : vector<4x256xf32> to vector<1x4x256xf32>
    tpu.vector_store %arg6[%c1_14, %c0_15, %c0_16], %27 {strides = array<i32>} : memref<3x4x256xf32, #tpu.memory_space<vmem>>, vector<1x4x256xf32>,
    %c2 = arith.constant 2 : index
    %c0_17 = arith.constant 0 : index
    %c0_18 = arith.constant 0 : index
    %28 = vector.load %arg6[%c2, %c0_17, %c0_18] : memref<3x4x256xf32, #tpu.memory_space<vmem>>, vector<1x4x256xf32>
    %29 = vector.shape_cast %28 : vector<1x4x256xf32> to vector<4x256xf32>
    %30 = arith.addf %29, %13 : vector<4x256xf32>
    %c2_19 = arith.constant 2 : index
    %c0_20 = arith.constant 0 : index
    %c0_21 = arith.constant 0 : index
    %31 = vector.load %arg6[%c2_19, %c0_20, %c0_21] : memref<3x4x256xf32, #tpu.memory_space<vmem>>, vector<1x4x256xf32>
    %32 = vector.shape_cast %31 : vector<1x4x256xf32> to vector<4x256xf32>
    %33 = vector.shape_cast %30 : vector<4x256xf32> to vector<1x4x256xf32>
    tpu.vector_store %arg6[%c2_19, %c0_20, %c0_21], %33 {strides = array<i32>} : memref<3x4x256xf32, #tpu.memory_space<vmem>>, vector<1x4x256xf32>,
    %c0_i32_22 = arith.constant 0 : i32
    %34 = arith.cmpi eq, %arg2, %c0_i32_22 : i32
    %35 = arith.extui %34 : i1 to i32
    %c0_i32_23 = arith.constant 0 : i32
    %36 = arith.cmpi ne, %35, %c0_i32_23 : i32
    scf.if %36 {
      %c0_24 = arith.constant 0 : index
      %c0_25 = arith.constant 0 : index
      %c0_26 = arith.constant 0 : index
      %37 = vector.load %arg6[%c0_24, %c0_25, %c0_26] : memref<3x4x256xf32, #tpu.memory_space<vmem>>, vector<1x4x256xf32>
      %38 = vector.shape_cast %37 : vector<1x4x256xf32> to vector<4x256xf32>
      %cst = arith.constant dense<0.000000e+00> : vector<4xf32>
      %39 = vector.multi_reduction <add>, %38, %cst [1] : vector<4x256xf32> to vector<4xf32>
      %40 = vector.shape_cast %39 : vector<4xf32> to vector<4x1xf32>
      %c0_27 = arith.constant 0 : index
      %c0_28 = arith.constant 0 : index
      %c0_29 = arith.constant 0 : index
      %c0_30 = arith.constant 0 : index
      %41 = vector.load %arg5[%c0_27, %c0_28, %c0_29, %c0_30] : memref<1x1x4x3xf32, #tpu.memory_space<vmem>>, vector<1x1x4x1xf32>
      %42 = vector.shape_cast %41 : vector<1x1x4x1xf32> to vector<4x1xf32>
      %43 = vector.shape_cast %40 : vector<4x1xf32> to vector<1x1x4x1xf32>
      tpu.vector_store %arg5[%c0_27, %c0_28, %c0_29, %c0_30], %43 {strides = array<i32>} : memref<1x1x4x3xf32, #tpu.memory_space<vmem>>, vector<1x1x4x1xf32>,
      %c1_31 = arith.constant 1 : index
      %c0_32 = arith.constant 0 : index
      %c0_33 = arith.constant 0 : index
      %44 = vector.load %arg6[%c1_31, %c0_32, %c0_33] : memref<3x4x256xf32, #tpu.memory_space<vmem>>, vector<1x4x256xf32>
      %45 = vector.shape_cast %44 : vector<1x4x256xf32> to vector<4x256xf32>
      %cst_34 = arith.constant dense<0.000000e+00> : vector<4xf32>
      %46 = vector.multi_reduction <add>, %45, %cst_34 [1] : vector<4x256xf32> to vector<4xf32>
      %47 = vector.shape_cast %46 : vector<4xf32> to vector<4x1xf32>
      %c0_35 = arith.constant 0 : index
      %c0_36 = arith.constant 0 : index
      %c0_37 = arith.constant 0 : index
      %c1_38 = arith.constant 1 : index
      %48 = vector.load %arg5[%c0_35, %c0_36, %c0_37, %c1_38] : memref<1x1x4x3xf32, #tpu.memory_space<vmem>>, vector<1x1x4x1xf32>
      %49 = vector.shape_cast %48 : vector<1x1x4x1xf32> to vector<4x1xf32>
      %50 = vector.shape_cast %47 : vector<4x1xf32> to vector<1x1x4x1xf32>
      tpu.vector_store %arg5[%c0_35, %c0_36, %c0_37, %c1_38], %50 {strides = array<i32>} : memref<1x1x4x3xf32, #tpu.memory_space<vmem>>, vector<1x1x4x1xf32>,
      %c2_39 = arith.constant 2 : index
      %c0_40 = arith.constant 0 : index
      %c0_41 = arith.constant 0 : index
      %51 = vector.load %arg6[%c2_39, %c0_40, %c0_41] : memref<3x4x256xf32, #tpu.memory_space<vmem>>, vector<1x4x256xf32>
      %52 = vector.shape_cast %51 : vector<1x4x256xf32> to vector<4x256xf32>
      %cst_42 = arith.constant dense<0.000000e+00> : vector<4xf32>
      %53 = vector.multi_reduction <add>, %52, %cst_42 [1] : vector<4x256xf32> to vector<4xf32>
      %54 = vector.shape_cast %53 : vector<4xf32> to vector<4x1xf32>
      %c0_43 = arith.constant 0 : index
      %c0_44 = arith.constant 0 : index
      %c0_45 = arith.constant 0 : index
      %c2_46 = arith.constant 2 : index
      %55 = vector.load %arg5[%c0_43, %c0_44, %c0_45, %c2_46] : memref<1x1x4x3xf32, #tpu.memory_space<vmem>>, vector<1x1x4x1xf32>
      %56 = vector.shape_cast %55 : vector<1x1x4x1xf32> to vector<4x1xf32>
      %57 = vector.shape_cast %54 : vector<4x1xf32> to vector<1x1x4x1xf32>
      tpu.vector_store %arg5[%c0_43, %c0_44, %c0_45, %c2_46], %57 {strides = array<i32>} : memref<1x1x4x3xf32, #tpu.memory_space<vmem>>, vector<1x1x4x1xf32>,
    } else {
    }
    return
  }
  func.func @transform_0(%arg0: i32, %arg1: i32, %arg2: i32) -> (i32, i32, i32) {
    %c1_i32 = arith.constant 1 : i32
    %0 = arith.muli %arg1, %c1_i32 : i32
    %1 = arith.addi %0, %arg2 : i32
    %c0_i32 = arith.constant 0 : i32
    %c0_i32_0 = arith.constant 0 : i32
    return %arg0, %c0_i32, %1 : i32, i32, i32
  }
  func.func @transform_1(%arg0: i32, %arg1: i32, %arg2: i32) -> (i32, i32, i32) {
    %c1_i32 = arith.constant 1 : i32
    %0 = arith.muli %arg1, %c1_i32 : i32
    %1 = arith.addi %0, %arg2 : i32
    %c0_i32 = arith.constant 0 : i32
    %c0_i32_0 = arith.constant 0 : i32
    return %arg0, %c0_i32, %1 : i32, i32, i32
  }
  func.func @transform_2(%arg0: i32, %arg1: i32, %arg2: i32) -> (i32, i32, i32, i32) {
    %c0_i32 = arith.constant 0 : i32
    %c0_i32_0 = arith.constant 0 : i32
    %c0_i32_1 = arith.constant 0 : i32
    return %arg0, %arg1, %c0_i32, %c0_i32_0 : i32, i32, i32, i32
  }
}

</mosaic_0001>

<bundles_post_ra>
// kernel: tpu_custom_call.1
= control target key start
LH: loop header
LB: loop body
LE: loop exit
PB: predicated region body
PF: predicated region fallthrough
CT: control target
= control target key end

     0   :  { %7 = vsyncpa [#allocation4], 0  ;;  %s733_s0 = inlined_call_operand.hbm [shape: f32[2,4,256], index: 0, kind: input, shape index: {}]   ;;  %s734_s1 = inlined_call_operand.vmem [shape: s8[2,1,256], index: 1, kind: input, shape index: {}]   ;;  %s735_s2 = inlined_call_operand.vmem [shape: f32[2,1,4,3], index: 2, kind: output, shape index: {}]  }
   0x1   :  { %9 = vsyncpa [#allocation4 + $0x1], 0  ;;  %s601_s9 = smov 0   ;;  %s603_s10 = smov 0  }
   0x2   :  { %s605_s11 = smov 0   ;;  %s607_s12 = smov 0  }
   0x3   :  { %s609_s13 = smov 0   ;;  %s611_s14 = smov 0  }
   0x4 LB: > { %s429_s15 = sadd.s32 4294967295, %s582_s14   ;;  %s34_s16 = sadd.s32 1, %s578_s13  ;;  %s582_s14 = sphi %s611_s14, %s15_s14   ;;  %s578_s13 = sphi %s609_s13, %s745_s13   ;;  %s574_s12 = sphi %s607_s12, %s744_s12   ;;  %s570_s11 = sphi %s605_s11, %s743_s11   ;;  %s566_s10 = sphi %s603_s10, %s742_s10   ;;  %s562_s9 = sphi %s601_s9, %s741_s9  }
   0x5   : > { %p36_p0 = scmp.ge.s32.totalorder %s34_s16, 2  ;;  %s45_s17 = sadd.s32 1, %s570_s11 }
   0x6   : > { %p52_p1 = scmp.ne.s32.totalorder %s570_s11, %s566_s10  ;;  %p53_p2 = scmp.eq.s32.totalorder %s582_s14, 0 }
   0x7   : > { %s747_s16 = smov (%p36_p0, %s34_s16), 0  ;;  %p58_p4 = scmp.ne.s32.totalorder %s566_s10, %s562_s9 }
   0x8   : > { %p637_p3 = por %p53_p2, %p52_p1  ;;  %s40_s19 = ssub.s32 %s578_s13, %s747_s16 }
   0x9   : > { %p59_p5 = scmp.eq.s32.totalorder %s429_s15, 0  ;;  %p43_p6 = scmp.eq.s32.totalorder %s40_s19, 0 }
   0xa   : > { %p452_p8 = scmp.lt.s32.totalorder %s582_s14, 2  ;;  %s140_s22 = sand.u32 1, %s570_s11  }
   0xb   : > { %p644_p7 = por %p59_p5, %p58_p4  ;;  %s444_s23 = sshll.u32 %s578_s13, 7 }
   0xc   : > { %s650_s21 = scalar_select %p43_p6, %s570_s11, %s45_s17  }
   0xd   : > { %s433_s24 = sshll.u32 %s140_s22, 3  ;;  %s657_s27 = scalar_lea.hbm %s733_s0, %s444_s23 }
   0xe   : > { %s144_s28 = scalar_lea.vmem [#allocation3], %s433_s24  ;;  %p661_p9 = pnand %p452_p8, %p637_p3 }
   0xf   : > { %s155_s29 = sshll.u32 %s144_s28, 4  ;;  %s141_s3 = scalar_lea.sflag [#allocation4], %s140_s22  ;;  %s665_s29 = int_to_ptr.vmem [resolvable:$true] %s155_s29 }
  0x10   : > { %s502_s4 = scalar_lea.hbm %s657_s27, 128  ;;  %p504_p13 = pneg %p661_p9 }
  0x11   : > { %p503_p12 = scmp.ne.s32.totalorder %s657_s27, %s502_s4  ;;  %s507_s7 = scalar_lea.hbm %s733_s0, 256 }
  0x12   : > { %p508_p2 = scmp.lt.u32.totalorder %s657_s27, %s733_s0  ;;  %p509_p3 = scmp.lt.u32.totalorder %s507_s7, %s502_s4 }
  0x13   : > { %p505_p0 = pnand %p504_p13, %p503_p12  ;;  %p511_p5 = scmp.lt.u32.totalorder %s502_s4, %s657_s27 }
  0x14   : > { %p510_p4 = por %p509_p3, %p508_p2 }
  0x15   : > { %p506_p1 = pneg %p505_p0 }
  0x16   : > { %p512_p6 = por %p511_p5, %p510_p4 }
  0x18   : > { %p513_p8 = pnand %p512_p6, %p506_p1 }
  0x1a   : > { %516 = shalt.err (!%p513_p8)
}
  0x1b   : > { %s517_s15 = scalar_lea.vmem %s665_s29, 128  ;;  %s584_s17 = smov [#allocation3]  }
  0x1c   : > { %p518_p12 = scmp.ne.s32.totalorder %s665_s29, %s517_s15  ;;  %s522_s18 = sshll.u32 %s584_s17, 4  ;;  %s523_s18 = int_to_ptr.vmem [resolvable:$false] %s522_s18 }
  0x1d   : > { %s524_s19 = scalar_lea.vmem %s523_s18, 256  ;;  %p525_p11 = scmp.lt.s32.totalorder %s665_s29, %s523_s18 }
  0x1e   : > { %p520_p0 = pnand %p518_p12, %p504_p13  ;;  %p526_p2 = scmp.lt.s32.totalorder %s524_s19, %s517_s15 }
  0x20   : > { %p521_p10 = pneg %p520_p0  ;;  %p527_p3 = por %p526_p2, %p525_p11 }
  0x22   : > { %p528_p4 = pnand %p527_p3, %p521_p10 }
  0x24   : > { %531 = shalt.err (!%p528_p4)
}
  0x25   : > { %451 = dma.hbm_to_vmem [thread:$0]  (!%p661_p9), %s657_s27, 128, %s665_s29, %s141_s3  }
  0x26   : > { %p739_p1 = scmp.lt.s32.totalorder %s582_s14, 3  ;;  %p740_p5 = scmp.ge.s32.totalorder %s582_s14, 1 }
  0x28   : > { %p175_p13 = pnand %p740_p5, %p739_p1 }
  0x29   : > { %s180_s22 = sand.u32 (!%p175_p13), 1, %s566_s10  }
  0x2a   : > { %178 = sbr.rel (%p175_p13) target bundleno = 221 (0xdd), region = 28  ;;  %s437_s23 = sshll.u32 (!%p175_p13), %s180_s22, 3 }
  0x2b   : > { %s181_s24 = scalar_lea.sflag (!%p175_p13), [#allocation4], %s180_s22  ;;  %s184_s25 = scalar_lea.vmem (!%p175_p13), [#allocation3], %s437_s23 }
  0x31   : > { %557 = dma.done.wait (%p644_p7), %s181_s24, 128  }
  0x32   : > { %559 = vsyncadd (%p644_p7), %s181_s24, 4294967168  ;;  %p220_p10 = scmp.lt.s32.totalorder %s574_s12, 1  ;;  %v246_v0 = vlaneseq  ;;  %v243_v10 = vld [vmem:[%s184_s25] sm:$0xff]  ;;  %v585_v12 = vmov 0.0   ;;  %vm294_vm2 = vcmask 1043456   ;;  %vm300_vm3 = vcmask 3072  }
  0x33   : > { %v275_v11 = vmul.f32 %v243_v10, %v243_v10  ;;  %vm311_vm4 = vcmask 11272   ;;  %vm322_vm5 = vcmask 19472  }
  0x34   : > { %s749_s12 = smov (!%p220_p10, %s574_s12), 1  ;;  %v247_v1 = vshrl.u32 %v246_v0, 7 }
  0x35   : > { %s438_s26 = sshll.u32 %s749_s12, 1  ;;  %v304_v18 = vcombine.high %v275_v11, %v275_v11  ;;  %v306_v25 = vsel %vm294_vm2, %v275_v11, 0.0  ;;  %s439_s20 = sshll.u32 %s749_s12, 2 }
  0x36   : > { %s226_s29 = scalar_lea.vmem %s734_s1, %s438_s26  ;;  %v250_v2 = vsub.s32 0, %v247_v1  ;;  %v254_v3 = vsub.s32 4, %v247_v1  ;;  %s235_s4 = scalar_lea.vmem %s735_s2, %s439_s20 }
  0x37   : > { %v244_v4 = vld [vmem:[%s226_s29] sm:$0x3]  ;;  %v307_v26 = vsel %vm294_vm2, %v304_v18, 0.0 }
  0x38   : > { %v245_v5 = vunpack.c.0.s8 %v244_v4  ;;  %v308_v28 = vadd.f32 %v307_v26, %v306_v25 }
  0x3a   : > { %v251_v6 = vrot.slane %v245_v5, %v250_v2  ;;  %v255_v7 = vrot.slane %v245_v5, %v254_v3 }
  0x3c   : > { %v259_v8 = vrot.slane %v251_v6, %v250_v2  ;;  %v263_v9 = vrot.slane %v255_v7, %v250_v2 }
  0x3e   : > { %vm264_vm0 = vcmp.eq.s32.totalorder %v259_v8, %v247_v1  ;;  %vm265_vm1 = vcmp.eq.s32.totalorder %v263_v9, %v247_v1 }
  0x3f   : > { %v440_v13 = vsel %vm264_vm0, 1.0, %v585_v12  ;;  %v441_v14 = vsel %vm265_vm1, 1.0, %v585_v12 }
  0x40   : > { %v272_v15 = vcombine.low %v440_v13, %v441_v14  ;;  %v445_v16 = vcombine.low %v441_v14, %v441_v14 }
  0x42   : > { %v274_v17 = vmul.f32 %v272_v15, %v243_v10  ;;  %v317_v19 = vsel %vm294_vm2, %v272_v15, 0.0  ;;  %v318_v20 = vsel %vm294_vm2, %v445_v16, 0.0 }
  0x43   : > { %v319_v21 = vadd.f32 %v318_v20, %v317_v19 }
  0x44   : > { %v292_v22 = vcombine.high %v274_v17, %v274_v17  ;;  %v295_v23 = vsel %vm294_vm2, %v274_v17, 0.0 }
  0x45   : > { %320 = vadd.xlane.f32.xlu1 %v319_v21 }
  0x46   : > { %v296_v24 = vsel %vm294_vm2, %v292_v22, 0.0 }
  0x47   : > { %v297_v27 = vadd.f32 %v296_v24, %v295_v23 }
  0x49   : > { %298 = vadd.xlane.f32.xlu0 %v297_v27 }
  0x4d   : > { %309 = vadd.xlane.f32.xlu0 %v308_v28 }
  0xd2   : > { %v321_v30 = vpop.xlane.xlu1 %320 }
  0xd6   : > { %v299_v29 = vpop.xlane.xlu0 %298 }
  0xd7   : > { %301 = vst.msk [vmem:[%s235_s4] sm:$0xf] %vm300_vm3, %v299_v29 }
  0xda   : > { %v310_v31 = vpop.xlane.xlu0 %309 }
  0xdb   : > { %312 = vst.msk [vmem:[%s235_s4] sm:$0xf] %vm311_vm4, %v310_v31 }
  0xdc   : > { %323 = vst.msk [vmem:[%s235_s4] sm:$0xf] %vm322_vm5, %v321_v30 }
  0xdd PF: > { %s15_s14 = sadd.s32 1, %s582_s14   ;;  %s741_s9 = smov %s566_s10 }
  0xde   : > { %p12_p7 = scmp.ge.s32.totalorder %s15_s14, 4   ;;  %s742_s10 = smov %s570_s11 }
  0xdf   : > { %s743_s11 = smov %s650_s21  ;;  %s744_s12 = smov %s578_s13 }
  0xe0   : > { %s745_s13 = smov %s747_s16  ;;  %14 = sbr.rel (!%p12_p7) target bundleno = 4 (0x4), region = 81 }
  0xe7   :  { %349 = vsyncpa [#allocation4], 1 }
  0xe8   :  { %351 = vsyncpa [#allocation4 + $0x1], 1 }

</bundles_post_ra>
